<compile_context>
chip_gen: v7x
topology: tpu7x:2x2x1
jax: 0.10.0
libtpu: 0.0.40
codegen_flags: <defaults>
</compile_context>

<pallas_src>
import functools

import jax
import jax.numpy as jnp
from jax.experimental import pallas as pl
from jax.experimental.pallas import tpu as pltpu


def _round_up(x, m):
    return ((x + m - 1) // m) * m


def _vmem_capacity_bytes():
    try:
        return int(pltpu.get_tpu_info().vmem_capacity_bytes)
    except Exception:
        return 64 << 20          # conservative fallback (v7x per-TC VMEM)


def _auto_tiles():
    """Per-generation default tiles derived from VMEM capacity."""
    cap = _vmem_capacity_bytes()
    if cap <= (96 << 20):        # v7x-class: 64 MiB per TensorCore
        return 512, 512          # ~48 MiB footprint at H=4096
    return 512, 1024             # v5e/v6e: 128 MiB -> ~72 MiB footprint


# ----------------------------- Pallas kernel -------------------------------

def _mlp_kernel(x_ref, wgu_ref, wd_ref, o_ref, acc_ref, *,
                ti, inter, mask_tail, w_dtype):
    """One (token tile, intermediate tile) step of down(silu(gate) * up)."""
    k = pl.program_id(1)
    last = pl.num_programs(1) - 1

    @pl.when(k == 0)
    def _init():
        acc_ref[...] = jnp.zeros_like(acc_ref)

    x = x_ref[...]                                                   # (tm, H)
    gate = jnp.dot(x, wgu_ref[0], preferred_element_type=jnp.float32)  # (tm, ti)
    up = jnp.dot(x, wgu_ref[1], preferred_element_type=jnp.float32)    # (tm, ti)
    act = (gate * jax.nn.sigmoid(gate)) * up                         # SiluAndMul

    if mask_tail:
        # Ragged last block on the reduction axis: only the tail step pays for
        # the iota/compare/select; every other step takes the plain-dot path.
        is_tail = k == last

        @pl.when(jnp.logical_not(is_tail))
        def _main_step():
            acc_ref[...] += jnp.dot(act.astype(w_dtype), wd_ref[...],
                                    preferred_element_type=jnp.float32)

        @pl.when(is_tail)
        def _tail_step():
            col = jax.lax.broadcasted_iota(jnp.int32, act.shape, 1) + k * ti
            act_m = jnp.where(col < inter, act, 0.0)
            wd = wd_ref[...]
            row = jax.lax.broadcasted_iota(jnp.int32, wd.shape, 0) + k * ti
            wd_m = jnp.where(row < inter, wd, jnp.zeros_like(wd))
            acc_ref[...] += jnp.dot(act_m.astype(w_dtype), wd_m,
                                    preferred_element_type=jnp.float32)
    else:
        acc_ref[...] += jnp.dot(act.astype(w_dtype), wd_ref[...],
                                preferred_element_type=jnp.float32)

    @pl.when(k == last)
    def _finalize():
        o_ref[...] = acc_ref[...].astype(o_ref.dtype)


def mlp_pallas(x2d, w_gate_up, w_down, *, tm=None, ti=None):
    """x2d: (T, H). w_gate_up: (2, H, I) packed [gate, up]. w_down: (I, H)."""
    T, H = x2d.shape
    two, Hg, inter = w_gate_up.shape
    assert two == 2 and Hg == H and w_down.shape == (inter, H)

    auto_tm, auto_ti = _auto_tiles()
    tm = auto_tm if tm is None else tm
    ti = auto_ti if ti is None else ti

    # Token tile: multiple of 8 (sublane), capped by the rounded token count.
    tm = max(8, min(_round_up(tm, 8), _round_up(T, 8)))
    # Intermediate tile: multiple of 128 (lane) or the full extent.
    if ti >= inter:
        ti = inter
    else:
        ti = (ti // 128) * 128
        if ti == 0:
            ti = inter
    mask_tail = (inter % ti) != 0

    grid = (pl.cdiv(T, tm), pl.cdiv(inter, ti))

    wb = jnp.dtype(w_gate_up.dtype).itemsize
    xb = jnp.dtype(x2d.dtype).itemsize
    # Double-buffered x / weights / output + f32 accumulator scratch.
    est = (2 * tm * H * xb            # x
           + 2 * 2 * H * ti * wb      # gate+up tile
           + 2 * ti * H * wb          # down tile
           + 2 * tm * H * xb          # output
           + tm * H * 4)              # accumulator
    cap = _vmem_capacity_bytes()
    vmem_limit = int(min(cap - (4 << 20), max(32 << 20, est * 5 // 4)))

    # Megacore: only shard the token axis when there is real work to split;
    # for decode-sized T this avoids duplicating the weight stream per core.
    token_sem = "parallel" if T >= 2 * tm else "arbitrary"

    kernel = functools.partial(_mlp_kernel, ti=ti, inter=inter,
                               mask_tail=mask_tail, w_dtype=w_down.dtype)

    return pl.pallas_call(
        kernel,
        out_shape=jax.ShapeDtypeStruct((T, H), x2d.dtype),
        grid_spec=pltpu.PrefetchScalarGridSpec(
            num_scalar_prefetch=0,
            grid=grid,
            in_specs=[
                pl.BlockSpec((tm, H), lambda i, k: (i, 0)),      # tokens
                pl.BlockSpec((2, H, ti), lambda i, k: (0, 0, k)),  # gate+up tile
                pl.BlockSpec((ti, H), lambda i, k: (k, 0)),      # down tile
            ],
            out_specs=pl.BlockSpec((tm, H), lambda i, k: (i, 0)),  # const in k
            scratch_shapes=[pltpu.VMEM((tm, H), jnp.float32)],
        ),
        compiler_params=pltpu.CompilerParams(
            dimension_semantics=(token_sem, "arbitrary"),
            vmem_limit_bytes=vmem_limit),
    )(x2d, w_gate_up, w_down)


# ------------------------------ Module glue --------------------------------

def pack_expert_params(w_gate, w_up, w_down):
    """Pack gate/up once (at parameter build time) -> 2 weight DMA streams."""
    return {"gate_up": jnp.stack([w_gate, w_up], axis=0), "down": w_down}


def vision_expert_mlp(hidden_states, params, lang_ids=None, vision_ids=None):
    """Mirrors VisionExpertMLP.forward (single device, so no all_reduce)."""
    B, S, H = hidden_states.shape

    def run_expert(x_sub, p):
        n = x_sub.shape[1]
        y = mlp_pallas(x_sub.reshape(B * n, H), p["gate_up"], p["down"])
        return y.reshape(B, n, H)

    if lang_ids is None and vision_ids is None:
        return run_expert(hidden_states, params["lang"])

    # TODO(synk): fuse the id gather/scatter into the kernel via scalar-prefetch
    # token-index maps + input_output_aliases to avoid the extra activation
    # HBM round trip.
    output = jnp.zeros_like(hidden_states)  # torch.empty_like; ids cover it
    if lang_ids is not None:
        output = output.at[:, lang_ids].set(
            run_expert(hidden_states[:, lang_ids, :], params["lang"]))
    if vision_ids is not None:
        output = output.at[:, vision_ids].set(
            run_expert(hidden_states[:, vision_ids, :], params["vis"]))
    # TODO(synk): dist.all_reduce path (world_size > 1) not modeled.
    return output


# ------------------------------- Reference ---------------------------------

def _mlp_ref(x, gate_up, down):
    xf = x.astype(jnp.float32)
    g = xf @ gate_up[0].astype(jnp.float32)
    u = xf @ gate_up[1].astype(jnp.float32)
    return (jax.nn.silu(g) * u) @ down.astype(jnp.float32)


def _ref(hidden_states, params, lang_ids, vision_ids):
    out = jnp.zeros(hidden_states.shape, jnp.float32)
    out = out.at[:, lang_ids].set(
        _mlp_ref(hidden_states[:, lang_ids, :],
                 params["lang"]["gate_up"], params["lang"]["down"]))
    out = out.at[:, vision_ids].set(
        _mlp_ref(hidden_states[:, vision_ids, :],
                 params["vis"]["gate_up"], params["vis"]["down"]))
    return out


# --------------------------------- Main -------------------------------------

if __name__ == "__main__":
    B, S, H, I = 2, 8, 32, 64  # batch, seq, hidden_size, intermediate_size
    dtype = jnp.bfloat16
    key = jax.random.PRNGKey(0)
    ks = jax.random.split(key, 12)

    hidden_states = jax.random.normal(ks[0], (B, S, H), jnp.float32).astype(dtype)

    def mk_w(k, shape):
        return (0.1 * jax.random.normal(k, shape, jnp.float32)).astype(dtype)

    params = {
        "lang": pack_expert_params(mk_w(ks[1], (H, I)), mk_w(ks[2], (H, I)),
                                   mk_w(ks[3], (I, H))),
        "vis":  pack_expert_params(mk_w(ks[4], (H, I)), mk_w(ks[5], (H, I)),
                                   mk_w(ks[6], (I, H))),
    }

    lang_ids = jnp.array([0, 1, 2, 5, 7], dtype=jnp.int32)
    vision_ids = jnp.array([3, 4, 6], dtype=jnp.int32)

    out = jax.jit(vision_expert_mlp)(hidden_states, params, lang_ids, vision_ids)
    out = jax.block_until_ready(out)
    assert out.shape == hidden_states.shape and out.dtype == hidden_states.dtype

    ref = _ref(hidden_states, params, lang_ids, vision_ids)
    assert jnp.allclose(out.astype(jnp.float32), ref, atol=5e-2, rtol=5e-2)

    # lang-only path (lang_ids is None and vision_ids is None).
    out_all = jax.block_until_ready(vision_expert_mlp(hidden_states, params))
    ref_all = _mlp_ref(hidden_states.reshape(B * S, H),
                       params["lang"]["gate_up"],
                       params["lang"]["down"]).reshape(B, S, H)
    assert jnp.allclose(out_all.astype(jnp.float32), ref_all, atol=5e-2, rtol=5e-2)

    # Multi-block grid: ragged token tile AND ragged intermediate (reduction)
    # tile, exercising the tail-only in-kernel masking path.
    T2, H2, I2 = 20, 32, 192
    x2 = jax.random.normal(ks[7], (T2, H2), jnp.float32).astype(dtype)
    wg2 = mk_w(ks[8], (H2, I2))
    wu2 = mk_w(ks[9], (H2, I2))
    wd2 = mk_w(ks[10], (I2, H2))
    gu2 = jnp.stack([wg2, wu2], axis=0)
    out2 = jax.block_until_ready(mlp_pallas(x2, gu2, wd2, tm=16, ti=128))
    ref2 = _mlp_ref(x2, gu2, wd2)
    assert jnp.allclose(out2.astype(jnp.float32), ref2, atol=5e-2, rtol=5e-2)

    print("KERNEL_OK")
</pallas_src>

<mosaic_0001>
module attributes {stable_mosaic.version = 11 : i64} {
  func.func @_mlp_kernel(%arg0: i32, %arg1: i32, %arg2: memref<16x32xbf16, #tpu.memory_space<vmem>>, %arg3: memref<2x32x64xbf16, #tpu.memory_space<vmem>>, %arg4: memref<64x32xbf16, #tpu.memory_space<vmem>>, %arg5: memref<16x32xbf16, #tpu.memory_space<vmem>>, %arg6: memref<16x32xf32, #tpu.memory_space<vmem>>) attributes {dimension_semantics = [#tpu.dimension_semantics<arbitrary>, #tpu.dimension_semantics<arbitrary>], iteration_bounds = array<i64: 1, 1>, scalar_prefetch = 0 : i64, scratch_operands = 1 : i64, tpu.core_type = #tpu.core_type<tc>, window_params = [{transform_indices = @transform_0, window_bounds = array<i64: 16, 32>}, {transform_indices = @transform_1, window_bounds = array<i64: 2, 32, 64>}, {transform_indices = @transform_2, window_bounds = array<i64: 64, 32>}, {transform_indices = @transform_3, window_bounds = array<i64: 16, 32>}]} {
    %c0_i32 = arith.constant 0 : i32
    %0 = arith.cmpi eq, %arg1, %c0_i32 : i32
    %1 = arith.extui %0 : i1 to i32
    %c0_i32_0 = arith.constant 0 : i32
    %2 = arith.cmpi ne, %1, %c0_i32_0 : i32
    scf.if %2 {
      %cst_18 = arith.constant 0.000000e+00 : f32
      %26 = vector.broadcast %cst_18 : f32 to vector<16x32xf32>
      %c0_19 = arith.constant 0 : index
      %c0_20 = arith.constant 0 : index
      %27 = vector.load %arg6[%c0_19, %c0_20] : memref<16x32xf32, #tpu.memory_space<vmem>>, vector<16x32xf32>
      tpu.vector_store %arg6[%c0_19, %c0_20], %26 {strides = array<i32>} : memref<16x32xf32, #tpu.memory_space<vmem>>, vector<16x32xf32>,
    } else {
    }
    %c0 = arith.constant 0 : index
    %c0_1 = arith.constant 0 : index
    %3 = vector.load %arg2[%c0, %c0_1] : memref<16x32xbf16, #tpu.memory_space<vmem>>, vector<16x32xbf16>
    %c0_2 = arith.constant 0 : index
    %c0_3 = arith.constant 0 : index
    %c0_4 = arith.constant 0 : index
    %4 = vector.load %arg3[%c0_2, %c0_3, %c0_4] : memref<2x32x64xbf16, #tpu.memory_space<vmem>>, vector<1x32x64xbf16>
    %5 = vector.shape_cast %4 : vector<1x32x64xbf16> to vector<32x64xbf16>
    %cst = arith.constant dense<0.000000e+00> : vector<16x64xf32>
    %6 = tpu.matmul %3, %5, %cst {dimension_numbers = #tpu.dot_dimension_numbers<[1], [0], [0], [1], [0, 0, 1, 1], [], []>} : vector<16x32xbf16>, vector<32x64xbf16>, vector<16x64xf32> -> vector<16x64xf32>
    %c1 = arith.constant 1 : index
    %c0_5 = arith.constant 0 : index
    %c0_6 = arith.constant 0 : index
    %7 = vector.load %arg3[%c1, %c0_5, %c0_6] : memref<2x32x64xbf16, #tpu.memory_space<vmem>>, vector<1x32x64xbf16>
    %8 = vector.shape_cast %7 : vector<1x32x64xbf16> to vector<32x64xbf16>
    %cst_7 = arith.constant dense<0.000000e+00> : vector<16x64xf32>
    %9 = tpu.matmul %3, %8, %cst_7 {dimension_numbers = #tpu.dot_dimension_numbers<[1], [0], [0], [1], [0, 0, 1, 1], [], []>} : vector<16x32xbf16>, vector<32x64xbf16>, vector<16x64xf32> -> vector<16x64xf32>
    %10 = arith.negf %6 : vector<16x64xf32>
    %11 = math.exp %10 : vector<16x64xf32>
    %cst_8 = arith.constant 1.000000e+00 : f32
    %12 = vector.broadcast %cst_8 : f32 to vector<16x64xf32>
    %13 = arith.addf %12, %11 : vector<16x64xf32>
    %14 = arith.divf %12, %13 : vector<16x64xf32>
    %15 = arith.mulf %6, %14 : vector<16x64xf32>
    %16 = arith.mulf %15, %9 : vector<16x64xf32>
    %c0_9 = arith.constant 0 : index
    %c0_10 = arith.constant 0 : index
    %17 = vector.load %arg6[%c0_9, %c0_10] : memref<16x32xf32, #tpu.memory_space<vmem>>, vector<16x32xf32>
    %18 = arith.truncf %16 : vector<16x64xf32> to vector<16x64xbf16>
    %c0_11 = arith.constant 0 : index
    %c0_12 = arith.constant 0 : index
    %19 = vector.load %arg4[%c0_11, %c0_12] : memref<64x32xbf16, #tpu.memory_space<vmem>>, vector<64x32xbf16>
    %cst_13 = arith.constant dense<0.000000e+00> : vector<16x32xf32>
    %20 = tpu.matmul %18, %19, %cst_13 {dimension_numbers = #tpu.dot_dimension_numbers<[1], [0], [0], [1], [0, 0, 1, 1], [], []>} : vector<16x64xbf16>, vector<64x32xbf16>, vector<16x32xf32> -> vector<16x32xf32>
    %21 = arith.addf %17, %20 : vector<16x32xf32>
    %c0_14 = arith.constant 0 : index
    %c0_15 = arith.constant 0 : index
    %22 = vector.load %arg6[%c0_14, %c0_15] : memref<16x32xf32, #tpu.memory_space<vmem>>, vector<16x32xf32>
    tpu.vector_store %arg6[%c0_14, %c0_15], %21 {strides = array<i32>} : memref<16x32xf32, #tpu.memory_space<vmem>>, vector<16x32xf32>,
    %c0_i32_16 = arith.constant 0 : i32
    %23 = arith.cmpi eq, %arg1, %c0_i32_16 : i32
    %24 = arith.extui %23 : i1 to i32
    %c0_i32_17 = arith.constant 0 : i32
    %25 = arith.cmpi ne, %24, %c0_i32_17 : i32
    scf.if %25 {
      %c0_18 = arith.constant 0 : index
      %c0_19 = arith.constant 0 : index
      %26 = vector.load %arg6[%c0_18, %c0_19] : memref<16x32xf32, #tpu.memory_space<vmem>>, vector<16x32xf32>
      %27 = arith.truncf %26 : vector<16x32xf32> to vector<16x32xbf16>
      %c0_20 = arith.constant 0 : index
      %c0_21 = arith.constant 0 : index
      %28 = vector.load %arg5[%c0_20, %c0_21] : memref<16x32xbf16, #tpu.memory_space<vmem>>, vector<16x32xbf16>
      tpu.vector_store %arg5[%c0_20, %c0_21], %27 {strides = array<i32>} : memref<16x32xbf16, #tpu.memory_space<vmem>>, vector<16x32xbf16>,
    } else {
    }
    return
  }
  func.func @transform_0(%arg0: i32, %arg1: i32) -> (i32, i32) {
    %c0_i32 = arith.constant 0 : i32
    %c0_i32_0 = arith.constant 0 : i32
    return %arg0, %c0_i32 : i32, i32
  }
  func.func @transform_1(%arg0: i32, %arg1: i32) -> (i32, i32, i32) {
    %c0_i32 = arith.constant 0 : i32
    %c0_i32_0 = arith.constant 0 : i32
    %c0_i32_1 = arith.constant 0 : i32
    return %c0_i32, %c0_i32_0, %arg1 : i32, i32, i32
  }
  func.func @transform_2(%arg0: i32, %arg1: i32) -> (i32, i32) {
    %c0_i32 = arith.constant 0 : i32
    %c0_i32_0 = arith.constant 0 : i32
    return %arg1, %c0_i32 : i32, i32
  }
  func.func @transform_3(%arg0: i32, %arg1: i32) -> (i32, i32) {
    %c0_i32 = arith.constant 0 : i32
    %c0_i32_0 = arith.constant 0 : i32
    return %arg0, %c0_i32 : i32, i32
  }
}

module attributes {stable_mosaic.version = 11 : i64} {
  func.func @_mlp_kernel(%arg0: i32, %arg1: i32, %arg2: memref<8x32xbf16, #tpu.memory_space<vmem>>, %arg3: memref<2x32x64xbf16, #tpu.memory_space<vmem>>, %arg4: memref<64x32xbf16, #tpu.memory_space<vmem>>, %arg5: memref<8x32xbf16, #tpu.memory_space<vmem>>, %arg6: memref<8x32xf32, #tpu.memory_space<vmem>>) attributes {dimension_semantics = [#tpu.dimension_semantics<arbitrary>, #tpu.dimension_semantics<arbitrary>], iteration_bounds = array<i64: 1, 1>, scalar_prefetch = 0 : i64, scratch_operands = 1 : i64, tpu.core_type = #tpu.core_type<tc>, window_params = [{transform_indices = @transform_0, window_bounds = array<i64: 8, 32>}, {transform_indices = @transform_1, window_bounds = array<i64: 2, 32, 64>}, {transform_indices = @transform_2, window_bounds = array<i64: 64, 32>}, {transform_indices = @transform_3, window_bounds = array<i64: 8, 32>}]} {
    %c0_i32 = arith.constant 0 : i32
    %0 = arith.cmpi eq, %arg1, %c0_i32 : i32
    %1 = arith.extui %0 : i1 to i32
    %c0_i32_0 = arith.constant 0 : i32
    %2 = arith.cmpi ne, %1, %c0_i32_0 : i32
    scf.if %2 {
      %cst_18 = arith.constant 0.000000e+00 : f32
      %26 = vector.broadcast %cst_18 : f32 to vector<8x32xf32>
      %c0_19 = arith.constant 0 : index
      %c0_20 = arith.constant 0 : index
      %27 = vector.load %arg6[%c0_19, %c0_20] : memref<8x32xf32, #tpu.memory_space<vmem>>, vector<8x32xf32>
      tpu.vector_store %arg6[%c0_19, %c0_20], %26 {strides = array<i32>} : memref<8x32xf32, #tpu.memory_space<vmem>>, vector<8x32xf32>,
    } else {
    }
    %c0 = arith.constant 0 : index
    %c0_1 = arith.constant 0 : index
    %3 = vector.load %arg2[%c0, %c0_1] : memref<8x32xbf16, #tpu.memory_space<vmem>>, vector<8x32xbf16>
    %c0_2 = arith.constant 0 : index
    %c0_3 = arith.constant 0 : index
    %c0_4 = arith.constant 0 : index
    %4 = vector.load %arg3[%c0_2, %c0_3, %c0_4] : memref<2x32x64xbf16, #tpu.memory_space<vmem>>, vector<1x32x64xbf16>
    %5 = vector.shape_cast %4 : vector<1x32x64xbf16> to vector<32x64xbf16>
    %cst = arith.constant dense<0.000000e+00> : vector<8x64xf32>
    %6 = tpu.matmul %3, %5, %cst {dimension_numbers = #tpu.dot_dimension_numbers<[1], [0], [0], [1], [0, 0, 1, 1], [], []>} : vector<8x32xbf16>, vector<32x64xbf16>, vector<8x64xf32> -> vector<8x64xf32>
    %c1 = arith.constant 1 : index
    %c0_5 = arith.constant 0 : index
    %c0_6 = arith.constant 0 : index
    %7 = vector.load %arg3[%c1, %c0_5, %c0_6] : memref<2x32x64xbf16, #tpu.memory_space<vmem>>, vector<1x32x64xbf16>
    %8 = vector.shape_cast %7 : vector<1x32x64xbf16> to vector<32x64xbf16>
    %cst_7 = arith.constant dense<0.000000e+00> : vector<8x64xf32>
    %9 = tpu.matmul %3, %8, %cst_7 {dimension_numbers = #tpu.dot_dimension_numbers<[1], [0], [0], [1], [0, 0, 1, 1], [], []>} : vector<8x32xbf16>, vector<32x64xbf16>, vector<8x64xf32> -> vector<8x64xf32>
    %10 = arith.negf %6 : vector<8x64xf32>
    %11 = math.exp %10 : vector<8x64xf32>
    %cst_8 = arith.constant 1.000000e+00 : f32
    %12 = vector.broadcast %cst_8 : f32 to vector<8x64xf32>
    %13 = arith.addf %12, %11 : vector<8x64xf32>
    %14 = arith.divf %12, %13 : vector<8x64xf32>
    %15 = arith.mulf %6, %14 : vector<8x64xf32>
    %16 = arith.mulf %15, %9 : vector<8x64xf32>
    %c0_9 = arith.constant 0 : index
    %c0_10 = arith.constant 0 : index
    %17 = vector.load %arg6[%c0_9, %c0_10] : memref<8x32xf32, #tpu.memory_space<vmem>>, vector<8x32xf32>
    %18 = arith.truncf %16 : vector<8x64xf32> to vector<8x64xbf16>
    %c0_11 = arith.constant 0 : index
    %c0_12 = arith.constant 0 : index
    %19 = vector.load %arg4[%c0_11, %c0_12] : memref<64x32xbf16, #tpu.memory_space<vmem>>, vector<64x32xbf16>
    %cst_13 = arith.constant dense<0.000000e+00> : vector<8x32xf32>
    %20 = tpu.matmul %18, %19, %cst_13 {dimension_numbers = #tpu.dot_dimension_numbers<[1], [0], [0], [1], [0, 0, 1, 1], [], []>} : vector<8x64xbf16>, vector<64x32xbf16>, vector<8x32xf32> -> vector<8x32xf32>
    %21 = arith.addf %17, %20 : vector<8x32xf32>
    %c0_14 = arith.constant 0 : index
    %c0_15 = arith.constant 0 : index
    %22 = vector.load %arg6[%c0_14, %c0_15] : memref<8x32xf32, #tpu.memory_space<vmem>>, vector<8x32xf32>
    tpu.vector_store %arg6[%c0_14, %c0_15], %21 {strides = array<i32>} : memref<8x32xf32, #tpu.memory_space<vmem>>, vector<8x32xf32>,
    %c0_i32_16 = arith.constant 0 : i32
    %23 = arith.cmpi eq, %arg1, %c0_i32_16 : i32
    %24 = arith.extui %23 : i1 to i32
    %c0_i32_17 = arith.constant 0 : i32
    %25 = arith.cmpi ne, %24, %c0_i32_17 : i32
    scf.if %25 {
      %c0_18 = arith.constant 0 : index
      %c0_19 = arith.constant 0 : index
      %26 = vector.load %arg6[%c0_18, %c0_19] : memref<8x32xf32, #tpu.memory_space<vmem>>, vector<8x32xf32>
      %27 = arith.truncf %26 : vector<8x32xf32> to vector<8x32xbf16>
      %c0_20 = arith.constant 0 : index
      %c0_21 = arith.constant 0 : index
      %28 = vector.load %arg5[%c0_20, %c0_21] : memref<8x32xbf16, #tpu.memory_space<vmem>>, vector<8x32xbf16>
      tpu.vector_store %arg5[%c0_20, %c0_21], %27 {strides = array<i32>} : memref<8x32xbf16, #tpu.memory_space<vmem>>, vector<8x32xbf16>,
    } else {
    }
    return
  }
  func.func @transform_0(%arg0: i32, %arg1: i32) -> (i32, i32) {
    %c0_i32 = arith.constant 0 : i32
    %c0_i32_0 = arith.constant 0 : i32
    return %arg0, %c0_i32 : i32, i32
  }
  func.func @transform_1(%arg0: i32, %arg1: i32) -> (i32, i32, i32) {
    %c0_i32 = arith.constant 0 : i32
    %c0_i32_0 = arith.constant 0 : i32
    %c0_i32_1 = arith.constant 0 : i32
    return %c0_i32, %c0_i32_0, %arg1 : i32, i32, i32
  }
  func.func @transform_2(%arg0: i32, %arg1: i32) -> (i32, i32) {
    %c0_i32 = arith.constant 0 : i32
    %c0_i32_0 = arith.constant 0 : i32
    return %arg1, %c0_i32 : i32, i32
  }
  func.func @transform_3(%arg0: i32, %arg1: i32) -> (i32, i32) {
    %c0_i32 = arith.constant 0 : i32
    %c0_i32_0 = arith.constant 0 : i32
    return %arg0, %c0_i32 : i32, i32
  }
}

</mosaic_0001>

<bundles_post_ra>
// kernel: vision_expert_mlp.3
= control target key start
LH: loop header
LB: loop body
LE: loop exit
PB: predicated region body
PF: predicated region fallthrough
CT: control target
= control target key end

     0   :  { %vm19_vm0 = vcmask 261120   ;;  %v307_v0 = vmov 0.0   ;;  %vm308_vm1 = vmmov 0   ;;  %vm181_vm2 = vcmask 523264   ;;  %s366_s1 = inlined_call_operand.vmem [shape: bf16[2,32,64], index: 1, kind: input, shape index: {}]   ;;  %s367_s0 = inlined_call_operand.vmem [shape: bf16[6,32], index: 0, kind: input, shape index: {}]   ;;  %s368_s2 = inlined_call_operand.vmem [shape: bf16[64,32], index: 2, kind: input, shape index: {}]   ;;  %s369_s3 = inlined_call_operand.vmem [shape: bf16[6,32], index: 3, kind: output, shape index: {}]  }
   0x1   :  { %265 = vmatprep.subr.bf16.mxu1 %v307_v0  ;;  %v295_v1 = vld [vmem:[%s366_s1] sm:$0xff]   ;;  %269 = vmatprep.mubr.msk.bf16.mxu1 %vm308_vm1, %v307_v0  ;;  %20 = vst.msk [vmem:[#allocation2] sm:$0xff] %vm19_vm0, %v307_v0  ;;  %v296_v2 = vld [vmem:[%s366_s1 + $0x8] sm:$0xff]   ;;  %v297_v4 = vld [vmem:[%s366_s1 + $0x10] sm:$0xff]   ;;  %vm232_vm3 = vcmask 257024  }
   0x2   :  { %281 = vmatprep.subr.bf16.mxu0 %v307_v0  ;;  %289 = vmatprep.mubr.msk.bf16.mxu0 %vm308_vm1, %v307_v0  ;;  %v21_v3 = vld [vmem:[%s367_s0] sm:$0xf]  ;;  %v298_v5 = vld [vmem:[%s366_s1 + $0x18] sm:$0xff]   ;;  %v300_v7 = vld [vmem:[%s368_s2 + $0x8] sm:$0xff]  }
   0x3   :  { %266 = vmatpush3.bf16.msra.mxu1 %v295_v1  ;;  %v299_v6 = vld [vmem:[%s368_s2] sm:$0xff]   ;;  %v301_v8 = vld [vmem:[%s368_s2 + $0x10] sm:$0xff]   ;;  %v302_v9 = vld [vmem:[%s368_s2 + $0x18] sm:$0xff]  }
   0x4   :  { %267 = vmatprep.subr.bf16.mxu1 %v307_v0  ;;  %282 = vmatpush3.bf16.msra.mxu0 %v299_v6 }
   0x5   :  { %283 = vmatprep.subr.bf16.mxu0 %v307_v0 }
   0x7   :  { %268 = vmatpush3.bf16.msra.mxu1 %v296_v2 }
   0x8   :  { %273 = vmatprep.subr.bf16.mxu1 %v307_v0  ;;  %284 = vmatpush3.bf16.msra.mxu0 %v300_v7  ;;  %v147_v25 = vld [vmem:[#allocation2] sm:$0xff] }
   0x9   :  { %285 = vmatprep.subr.bf16.mxu0 %v307_v0 }
   0xa   :  { %270 = vmatmul.mubr.msk.bf16.vlgmr.msra.gmra.mrb[0].mxu1 %vm19_vm0, %v21_v3 }
   0xb   :  { %274 = vmatpush3.bf16.msra.mxu1 %v297_v4  ;;  %277 = vmatprep.mubr.msk.bf16.mxu1 %vm308_vm1, %v307_v0 }
   0xc   :  { %275 = vmatprep.subr.bf16.mxu1 %v307_v0  ;;  %286 = vmatpush3.bf16.msra.mxu0 %v301_v8 }
   0xd   :  { %287 = vmatprep.subr.bf16.mxu0 %v307_v0 }
   0xf   :  { %276 = vmatpush3.bf16.msra.mxu1 %v298_v5 }
  0x10   :  { %288 = vmatpush3.bf16.msra.mxu0 %v302_v9 }
  0x12   :  { %278 = vmatmul.mubr.msk.bf16.vlgmr.msra.gmra.mrb[4].mxu1 %vm19_vm0, %v21_v3 }
  0xdd   :  { %v76_v10 = vpop.f32.mrb[0].mxu1 }
  0xde   :  { %v248_v11 = vmul.f32 -1.442695, %v76_v10  ;;  %v271_v12 = vpop.f32.mrb[1].mxu1 }
  0xdf   :  { %v79_v13 = vpop.f32.mrb[2].mxu1 }
  0xe0   :  { %303 = vpow2.f32 %v248_v11  ;;  %v272_v14 = vpop.f32.mrb[3].mxu1 }
  0xe5   :  { %v133_v15 = vpop.f32.mrb[4].mxu1 }
  0xe6   :  { %v279_v16 = vpop.f32.mrb[5].mxu1 }
  0xe7   :  { %v136_v17 = vpop.f32.mrb[6].mxu1 }
  0xe8   :  { %v280_v18 = vpop.f32.mrb[7].mxu1 }
  0xea   :  { %v304_v19 = vpop.eup %303 }
  0xeb   :  { %v142_v20 = vadd.f32 1.0, %v304_v19 }
  0xed   :  { %305 = vrcp.f32 %v142_v20 }
  0xf7   :  { %v306_v21 = vpop.eup %305 }
  0xf8   :  { %v145_v22 = vmul.f32 %v306_v21, %v76_v10 }
  0xfa   :  { %v146_v23 = vmul.f32 %v145_v22, %v133_v15 }
  0xfc   :  { %v148_v24 = vpack.c.bf16 %v146_v23, %v146_v23 }
  0xfe   :  { %290 = vmatmul.mubr.msk.bf16.vlgmr.msra.gmra.mrb[0].mxu0 %vm181_vm2, %v148_v24 }
 0x1d1   :  { %v219_v26 = vpop.f32.mrb[0].mxu0 }
 0x1d2   :  { %v225_v27 = vadd.f32 %v219_v26, %v147_v25  ;;  %v291_v28 = vpop.f32.mrb[1].mxu0 }
 0x1d3   :  { %v222_v29 = vpop.f32.mrb[2].mxu0 }
 0x1d4   :  { %226 = vst.msk [vmem:[#allocation2] sm:$0xff] %vm19_vm0, %v225_v27  ;;  %v292_v30 = vpop.f32.mrb[3].mxu0 }
 0x1db   :  { %v230_v31 = vld [vmem:[#allocation2] sm:$0xff] }
 0x1dc   :  { %v231_v32 = vpack.c.bf16 %v230_v31, %v230_v31 }
 0x1de   :  { %233 = vst.msk [vmem:[%s369_s3] sm:$0xf] %vm232_vm3, %v231_v32 }

// kernel: vision_expert_mlp.2
= control target key start
LH: loop header
LB: loop body
LE: loop exit
PB: predicated region body
PF: predicated region fallthrough
CT: control target
= control target key end

     0   :  { %vm19_vm0 = vcmask 261120   ;;  %v348_v0 = vmov 0.0   ;;  %vm349_vm1 = vmmov 0   ;;  %vm199_vm2 = vcmask 523264   ;;  %s412_s1 = inlined_call_operand.vmem [shape: bf16[2,32,64], index: 1, kind: input, shape index: {}]   ;;  %s413_s0 = inlined_call_operand.vmem [shape: bf16[10,32], index: 0, kind: input, shape index: {}]   ;;  %s414_s2 = inlined_call_operand.vmem [shape: bf16[64,32], index: 2, kind: input, shape index: {}]   ;;  %s415_s3 = inlined_call_operand.vmem [shape: bf16[10,32], index: 3, kind: output, shape index: {}]  }
   0x1   :  { %301 = vmatprep.subr.bf16.mxu1 %v348_v0  ;;  %v331_v1 = vld [vmem:[%s412_s1] sm:$0xff]   ;;  %305 = vmatprep.mubr.msk.bf16.mxu1 %vm349_vm1, %v348_v0  ;;  %20 = vst.msk [vmem:[#allocation2] sm:$0xff] %vm19_vm0, %v348_v0  ;;  %21 = vst.msk [vmem:[#allocation2 + $0x8] sm:$0xff] %vm19_vm0, %v348_v0  ;;  %v332_v2 = vld [vmem:[%s412_s1 + $0x8] sm:$0xff]   ;;  %vm261_vm3 = vcmask 257024  }
   0x2   :  { %317 = vmatprep.subr.bf16.mxu0 %v348_v0  ;;  %325 = vmatprep.mubr.msk.bf16.mxu0 %vm349_vm1, %v348_v0  ;;  %v333_v3 = vld [vmem:[%s413_s0] sm:$0xff]   ;;  %v334_v4 = vld [vmem:[%s412_s1 + $0x10] sm:$0xff]   ;;  %v335_v5 = vld [vmem:[%s412_s1 + $0x18] sm:$0xff]  }
   0x3   :  { %302 = vmatpush3.bf16.msra.mxu1 %v331_v1  ;;  %v336_v6 = vld [vmem:[%s414_s2] sm:$0xff]   ;;  %v337_v7 = vld [vmem:[%s414_s2 + $0x8] sm:$0xff]   ;;  %v338_v8 = vld [vmem:[%s414_s2 + $0x10] sm:$0xff]  }
   0x4   :  { %303 = vmatprep.subr.bf16.mxu1 %v348_v0  ;;  %318 = vmatpush3.bf16.msra.mxu0 %v336_v6  ;;  %v339_v9 = vld [vmem:[%s414_s2 + $0x18] sm:$0xff]  }
   0x5   :  { %319 = vmatprep.subr.bf16.mxu0 %v348_v0 }
   0x7   :  { %304 = vmatpush3.bf16.msra.mxu1 %v332_v2 }
   0x8   :  { %309 = vmatprep.subr.bf16.mxu1 %v348_v0  ;;  %320 = vmatpush3.bf16.msra.mxu0 %v337_v7  ;;  %v164_v31 = vld [vmem:[#allocation2] sm:$0xff]  ;;  %v165_v33 = vld [vmem:[#allocation2 + $0x8] sm:$0xff] }
   0x9   :  { %321 = vmatprep.subr.bf16.mxu0 %v348_v0 }
   0xa   :  { %306 = vmatmul.mubr.msk.bf16.vlgmr.msra.gmra.mrb[0].mxu1 %vm19_vm0, %v333_v3 }
   0xb   :  { %310 = vmatpush3.bf16.msra.mxu1 %v334_v4  ;;  %313 = vmatprep.mubr.msk.bf16.mxu1 %vm349_vm1, %v348_v0 }
   0xc   :  { %311 = vmatprep.subr.bf16.mxu1 %v348_v0  ;;  %322 = vmatpush3.bf16.msra.mxu0 %v338_v8 }
   0xd   :  { %323 = vmatprep.subr.bf16.mxu0 %v348_v0 }
   0xf   :  { %312 = vmatpush3.bf16.msra.mxu1 %v335_v5 }
  0x10   :  { %324 = vmatpush3.bf16.msra.mxu0 %v339_v9 }
  0x12   :  { %314 = vmatmul.mubr.msk.bf16.vlgmr.msra.gmra.mrb[4].mxu1 %vm19_vm0, %v333_v3 }
  0xdd   :  { %v83_v10 = vpop.f32.mrb[0].mxu1 }
  0xde   :  { %v279_v11 = vmul.f32 -1.442695, %v83_v10  ;;  %v307_v12 = vpop.f32.mrb[1].mxu1 }
  0xdf   :  { %v86_v13 = vpop.f32.mrb[2].mxu1 }
  0xe0   :  { %340 = vpow2.f32 %v279_v11  ;;  %v280_v14 = vmul.f32 -1.442695, %v86_v13  ;;  %v308_v15 = vpop.f32.mrb[3].mxu1 }
  0xe2   :  { %342 = vpow2.f32 %v280_v14 }
  0xe5   :  { %v141_v16 = vpop.f32.mrb[4].mxu1 }
  0xe6   :  { %v315_v17 = vpop.f32.mrb[5].mxu1 }
  0xe7   :  { %v144_v18 = vpop.f32.mrb[6].mxu1 }
  0xe8   :  { %v316_v19 = vpop.f32.mrb[7].mxu1 }
  0xea   :  { %v341_v20 = vpop.eup %340 }
  0xeb   :  { %v154_v21 = vadd.f32 1.0, %v341_v20 }
  0xec   :  { %v343_v22 = vpop.eup %342 }
  0xed   :  { %344 = vrcp.f32 %v154_v21  ;;  %v155_v23 = vadd.f32 1.0, %v343_v22 }
  0xef   :  { %346 = vrcp.f32 %v155_v23 }
  0xf7   :  { %v345_v24 = vpop.eup %344 }
  0xf8   :  { %v160_v25 = vmul.f32 %v345_v24, %v83_v10 }
  0xf9   :  { %v347_v26 = vpop.eup %346 }
  0xfa   :  { %v161_v27 = vmul.f32 %v347_v26, %v86_v13  ;;  %v162_v28 = vmul.f32 %v160_v25, %v141_v16 }
  0xfc   :  { %v163_v29 = vmul.f32 %v161_v27, %v144_v18 }
  0xfe   :  { %v166_v30 = vpack.c.bf16 %v163_v29, %v162_v28 }
 0x100   :  { %326 = vmatmul.mubr.msk.bf16.vlgmr.msra.gmra.mrb[0].mxu0 %vm199_vm2, %v166_v30 }
 0x1d3   :  { %v237_v32 = vpop.f32.mrb[0].mxu0 }
 0x1d4   :  { %v244_v34 = vadd.f32 %v237_v32, %v164_v31  ;;  %v327_v35 = vpop.f32.mrb[1].mxu0 }
 0x1d5   :  { %v240_v36 = vpop.f32.mrb[2].mxu0 }
 0x1d6   :  { %246 = vst.msk [vmem:[#allocation2] sm:$0xff] %vm19_vm0, %v244_v34  ;;  %v245_v37 = vadd.f32 %v240_v36, %v165_v33  ;;  %v328_v38 = vpop.f32.mrb[3].mxu0 }
 0x1d8   :  { %247 = vst.msk [vmem:[#allocation2 + $0x8] sm:$0xff] %vm19_vm0, %v245_v37 }
 0x1dd   :  { %v251_v39 = vld [vmem:[#allocation2] sm:$0xff] }
 0x1de   :  { %v288_v40 = vpack.c.bf16 %v251_v39, %v251_v39 }
 0x1df   :  { %v252_v41 = vld [vmem:[#allocation2 + $0x8] sm:$0xff] }
 0x1e0   :  { %262 = vst.msk [vmem:[%s415_s3] sm:$0xf] %vm261_vm3, %v288_v40  ;;  %v289_v42 = vpack.c.bf16 %v252_v41, %v252_v41 }
 0x1e2   :  { %263 = vst.msk [vmem:[%s415_s3 + $0x4] sm:$0xf] %vm261_vm3, %v289_v42 }

</bundles_post_ra>
